<compile_context>
chip_gen: v7x
topology: tpu7x:2x2x1
jax: 0.10.0
libtpu: 0.0.40
codegen_flags: <defaults>
</compile_context>

<pallas_src>
import functools

import jax
import jax.numpy as jnp
from jax import lax
from jax.experimental import pallas as pl
from jax.experimental.pallas import tpu as pltpu


# ----------------------------------------------------------------------------
# Kernel 1: fused Linear (x @ W + b) + ReLU, tiled over rows.
# ----------------------------------------------------------------------------
def linear_relu_kernel(x_ref, w_ref, b_ref, o_ref):
    # x: (TM, U), w: (U, U), b: (1, U)
    y = jnp.dot(x_ref[...], w_ref[...], preferred_element_type=jnp.float32)
    o_ref[...] = jnp.maximum(y + b_ref[...], 0.0).astype(o_ref.dtype)


def linear_relu(x2d, w, b, *, tm=512):
    M, U = x2d.shape
    tm = M if M <= tm else tm  # small inputs: one full-extent block
    return pl.pallas_call(
        linear_relu_kernel,
        out_shape=jax.ShapeDtypeStruct((M, U), jnp.float32),
        grid=(pl.cdiv(M, tm),),
        in_specs=[
            pl.BlockSpec((tm, U), lambda i: (i, 0)),
            pl.BlockSpec((U, U), lambda i: (0, 0)),   # weights resident
            pl.BlockSpec((1, U), lambda i: (0, 0)),
        ],
        out_specs=pl.BlockSpec((tm, U), lambda i: (i, 0)),
        compiler_params=pltpu.CompilerParams(dimension_semantics=("parallel",)),
    )(x2d, w, b)


# ----------------------------------------------------------------------------
# Kernel 2: per-batch attention over all heads.
#   softmax(Q_h K_h^T / sqrt(d)) * qmask @ V_h for every head h, written as one
#   lane-dense (TQ, U) block.
# ----------------------------------------------------------------------------
def attn_kernel(qmask_ref, q_ref, k_ref, v_ref, o_ref, *, num_heads, head_dim):
    q = q_ref[0]          # (TQ, U)
    k = k_ref[0]          # (Lk, U)
    v = v_ref[0]          # (Lk, U)
    mask = qmask_ref[0]   # (TQ, 1) in {0, 1}

    scale = 1.0 / (float(head_dim) ** 0.5)
    # Contract the last (d) dims directly on the MXU -- no k.T transpose.
    dims = (((1,), (1,)), ((), ()))

    outs = []
    for h in range(num_heads):            # static unroll over heads
        lo = h * head_dim
        qh = q[:, lo:lo + head_dim] * scale   # fold 1/sqrt(d) into the small operand
        kh = k[:, lo:lo + head_dim]
        vh = v[:, lo:lo + head_dim]

        s = lax.dot_general(qh, kh, dims, preferred_element_type=jnp.float32)  # (TQ, Lk)

        # softmax over the key axis
        m = jnp.max(s, axis=-1, keepdims=True)
        e = jnp.exp(s - m)
        p = e * pl.reciprocal(jnp.sum(e, axis=-1, keepdims=True), approx=True)

        # post-softmax query mask (same mask for every head of this batch)
        p = p * mask

        outs.append(jnp.dot(p, vh, preferred_element_type=jnp.float32))  # (TQ, d)

    # Single lane-dense store: (TQ, U) with head h at features [h*d, (h+1)*d)
    o_ref[0] = jnp.concatenate(outs, axis=-1).astype(o_ref.dtype)


def multihead_attention_forward(queries, keys, values, params, num_heads, *, tq=512):
    """Pure-JAX glue around the Pallas kernels. Returns (B, Lq, U)."""
    B, Lq, U = queries.shape
    _, Lk, _ = keys.shape
    assert U % num_heads == 0
    d = U // num_heads

    Wq, bq, Wk, bk, Wv, bv = params

    # Q/K/V projections (Linear + ReLU), tiled + pipelined on the MXU.
    Q = linear_relu(queries.reshape(B * Lq, U), Wq, bq).reshape(B, Lq, U)
    K = linear_relu(keys.reshape(B * Lk, U), Wk, bk).reshape(B, Lk, U)
    V = linear_relu(values.reshape(B * Lk, U), Wv, bv).reshape(B, Lk, U)

    # Tiny query-mask precompute (replaces per-head DMA of raw queries).
    qmask = jnp.sign(jnp.abs(jnp.sum(queries, axis=-1, keepdims=True)))  # (B, Lq, 1)

    tq = Lq if Lq <= tq else tq
    kern = functools.partial(attn_kernel, num_heads=num_heads, head_dim=d)

    out = pl.pallas_call(
        kern,
        out_shape=jax.ShapeDtypeStruct((B, Lq, U), jnp.float32),
        grid=(B, pl.cdiv(Lq, tq)),
        in_specs=[
            pl.BlockSpec((1, tq, 1), lambda b, i: (b, i, 0)),   # qmask
            pl.BlockSpec((1, tq, U), lambda b, i: (b, i, 0)),   # Q tile
            pl.BlockSpec((1, Lk, U), lambda b, i: (b, 0, 0)),   # K (resident over i)
            pl.BlockSpec((1, Lk, U), lambda b, i: (b, 0, 0)),   # V (resident over i)
        ],
        out_specs=pl.BlockSpec((1, tq, U), lambda b, i: (b, i, 0)),
        compiler_params=pltpu.CompilerParams(
            dimension_semantics=("parallel", "parallel")),
    )(qmask, Q, K, V)

    # Output already in (B, Lq, U) with the torch chunk/concat head ordering.
    return out


# ----------------------------------------------------------------------------
# Pure-JAX reference (mirrors the PyTorch forward, last_layer=False)
# ----------------------------------------------------------------------------
def reference_forward(queries, keys, values, params, num_heads):
    Wq, bq, Wk, bk, Wv, bv = params
    Q = jax.nn.relu(queries @ Wq + bq)
    K = jax.nn.relu(keys @ Wk + bk)
    V = jax.nn.relu(values @ Wv + bv)
    Q_ = jnp.concatenate(jnp.split(Q, num_heads, axis=2), axis=0)
    K_ = jnp.concatenate(jnp.split(K, num_heads, axis=2), axis=0)
    V_ = jnp.concatenate(jnp.split(V, num_heads, axis=2), axis=0)
    scores = jnp.einsum("bqd,bkd->bqk", Q_, K_) / (K_.shape[-1] ** 0.5)
    p = jax.nn.softmax(scores, axis=-1)
    qmask = jnp.sign(jnp.abs(jnp.sum(queries, axis=-1)))           # (B, Lq)
    qmask = jnp.tile(qmask, (num_heads, 1))[:, :, None]            # (B*H, Lq, 1)
    p = p * qmask
    out_ = jnp.einsum("bqk,bkd->bqd", p, V_)
    return jnp.concatenate(jnp.split(out_, num_heads, axis=0), axis=2)


if __name__ == "__main__":
    # Small shapes: batch=2, seq=8, num_units=32, num_heads=2
    B, L, U, H = 2, 8, 32, 2
    key = jax.random.PRNGKey(0)
    kq, kk, kv, kwq, kwk, kwv = jax.random.split(key, 6)

    queries = jax.random.normal(kq, (B, L, U), dtype=jnp.float32)
    # zero out one query row so the query mask actually does something
    queries = queries.at[0, 3, :].set(0.0)
    keys_in = jax.random.normal(kk, (B, L, U), dtype=jnp.float32)
    values_in = jax.random.normal(kv, (B, L, U), dtype=jnp.float32)

    # Deterministic parameter init (stored as (in, out); used as x @ W + b).
    scale = 1.0 / (U ** 0.5)
    Wq = jax.random.uniform(kwq, (U, U), jnp.float32, -scale, scale)
    Wk = jax.random.uniform(kwk, (U, U), jnp.float32, -scale, scale)
    Wv = jax.random.uniform(kwv, (U, U), jnp.float32, -scale, scale)
    bq = jnp.zeros((1, U), jnp.float32)
    bk = jnp.zeros((1, U), jnp.float32)
    bv = jnp.zeros((1, U), jnp.float32)
    params = (Wq, bq, Wk, bk, Wv, bv)

    out = multihead_attention_forward(queries, keys_in, values_in, params, H)
    out = jax.block_until_ready(out)

    ref = reference_forward(queries, keys_in, values_in, params, H)
    assert out.shape == (B, L, U)
    # Slightly relaxed tolerance: the softmax denominator uses the EUP
    # approximate reciprocal (pl.reciprocal(..., approx=True)) per the perf
    # review; everything else is f32 with f32 accumulation.
    assert jnp.allclose(out, ref, atol=1e-3, rtol=1e-3), "mismatch vs reference"

    print("KERNEL_OK")
</pallas_src>

<mosaic_0001>
module attributes {stable_mosaic.version = 11 : i64} {
  func.func @linear_relu_kernel(%arg0: i32, %arg1: memref<16x32xf32, #tpu.memory_space<vmem>>, %arg2: memref<32x32xf32, #tpu.memory_space<vmem>>, %arg3: memref<1x32xf32, #tpu.memory_space<vmem>>, %arg4: memref<16x32xf32, #tpu.memory_space<vmem>>) attributes {dimension_semantics = [#tpu.dimension_semantics<parallel>], iteration_bounds = array<i64: 1>, scalar_prefetch = 0 : i64, scratch_operands = 0 : i64, tpu.core_type = #tpu.core_type<tc>, window_params = [{transform_indices = @transform_0, window_bounds = array<i64: 16, 32>}, {pipeline_mode = #tpu.pipeline_mode<synchronous>, transform_indices = @transform_1, window_bounds = array<i64: 32, 32>}, {pipeline_mode = #tpu.pipeline_mode<synchronous>, transform_indices = @transform_2, window_bounds = array<i64: 1, 32>}, {transform_indices = @transform_3, window_bounds = array<i64: 16, 32>}]} {
    %c0 = arith.constant 0 : index
    %c0_0 = arith.constant 0 : index
    %0 = vector.load %arg1[%c0, %c0_0] : memref<16x32xf32, #tpu.memory_space<vmem>>, vector<16x32xf32>
    %c0_1 = arith.constant 0 : index
    %c0_2 = arith.constant 0 : index
    %1 = vector.load %arg2[%c0_1, %c0_2] : memref<32x32xf32, #tpu.memory_space<vmem>>, vector<32x32xf32>
    %cst = arith.constant dense<0.000000e+00> : vector<16x32xf32>
    %2 = tpu.matmul %0, %1, %cst {dimension_numbers = #tpu.dot_dimension_numbers<[1], [0], [0], [1], [0, 0, 1, 1], [], []>} : vector<16x32xf32>, vector<32x32xf32>, vector<16x32xf32> -> vector<16x32xf32>
    %c0_3 = arith.constant 0 : index
    %c0_4 = arith.constant 0 : index
    %3 = vector.load %arg3[%c0_3, %c0_4] : memref<1x32xf32, #tpu.memory_space<vmem>>, vector<1x32xf32>
    %4 = vector.broadcast %3 : vector<1x32xf32> to vector<16x32xf32>
    %5 = arith.addf %2, %4 : vector<16x32xf32>
    %cst_5 = arith.constant 0.000000e+00 : f32
    %6 = vector.broadcast %cst_5 : f32 to vector<16x32xf32>
    %7 = arith.maximumf %5, %6 : vector<16x32xf32>
    %c0_6 = arith.constant 0 : index
    %c0_7 = arith.constant 0 : index
    %8 = vector.load %arg4[%c0_6, %c0_7] : memref<16x32xf32, #tpu.memory_space<vmem>>, vector<16x32xf32>
    tpu.vector_store %arg4[%c0_6, %c0_7], %7 {strides = array<i32>} : memref<16x32xf32, #tpu.memory_space<vmem>>, vector<16x32xf32>,
    return
  }
  func.func @transform_0(%arg0: i32) -> (i32, i32) {
    %c0_i32 = arith.constant 0 : i32
    %c0_i32_0 = arith.constant 0 : i32
    return %arg0, %c0_i32 : i32, i32
  }
  func.func @transform_1(%arg0: i32) -> (i32, i32) {
    %c0_i32 = arith.constant 0 : i32
    %c0_i32_0 = arith.constant 0 : i32
    %c0_i32_1 = arith.constant 0 : i32
    return %c0_i32, %c0_i32_0 : i32, i32
  }
  func.func @transform_2(%arg0: i32) -> (i32, i32) {
    %c0_i32 = arith.constant 0 : i32
    %c0_i32_0 = arith.constant 0 : i32
    %c0_i32_1 = arith.constant 0 : i32
    return %c0_i32, %c0_i32_0 : i32, i32
  }
  func.func @transform_3(%arg0: i32) -> (i32, i32) {
    %c0_i32 = arith.constant 0 : i32
    %c0_i32_0 = arith.constant 0 : i32
    return %arg0, %c0_i32 : i32, i32
  }
}

</mosaic_0001>

<bundles_post_ra>
// kernel: tpu_custom_call.1
= control target key start
LH: loop header
LB: loop body
LE: loop exit
PB: predicated region body
PF: predicated region fallthrough
CT: control target
= control target key end

     0   :  { %8 = vsyncpa [#allocation3], 0  ;;  %s342_s0 = inlined_call_operand.hbm [shape: f32[16,32], index: 0, kind: input, shape index: {}]   ;;  %s343_s1 = inlined_call_operand.hbm [shape: f32[32,32], index: 1, kind: input, shape index: {}]   ;;  %s344_s2 = inlined_call_operand.vmem [shape: f32[1,32], index: 2, kind: input, shape index: {}]   ;;  %s345_s3 = inlined_call_operand.hbm [shape: f32[16,32], index: 3, kind: output, shape index: {}]  }
   0x1   :  { %9 = vsyncpa [#allocation6], 0 }
   0x2   :  { %10 = vsyncpa [#allocation4], 0  ;;  %s265_s12 = smov [#allocation2]   ;;  %s193_s16 = scalar_lea.hbm %s342_s0, 256 }
   0x3   :  { %s16_s13 = sshll.u32 %s265_s12, 4  ;;  %p194_p0 = scmp.ne.s32.totalorder %s342_s0, %s193_s16  ;;  %s17_s13 = int_to_ptr.vmem [resolvable:$true] %s16_s13 }
   0x4   :  { %p197_p1 = scmp.lt.u32.totalorder %s193_s16, %s342_s0 }
   0x6   :  { %p199_p2 = pnand %p197_p1, %p194_p0 }
   0x8   :  { %202 = shalt.err (!%p199_p2)
}
   0x9   :  { %s203_s21 = scalar_lea.vmem %s17_s13, 256  ;;  %p208_p4 = scmp.lt.s32.totalorder %s17_s13, %s17_s13 }
   0xa   :  { %p204_p3 = scmp.ne.s32.totalorder %s17_s13, %s203_s21  ;;  %p209_p5 = scmp.lt.s32.totalorder %s203_s21, %s203_s21 }
   0xc   :  { %p210_p6 = por %p209_p5, %p208_p4 }
   0xe   :  { %p211_p7 = pnand %p210_p6, %p204_p3 }
  0x10   :  { %214 = shalt.err (!%p211_p7)
}
  0x11   :  { %s266_s22 = smov 128   ;;  %s267_s23 = smov 8  }
  0x12   :  { %22 = dma.hbm_to_vmem [thread:$0]  %s342_s0, 256, %s17_s13, [#allocation3], %s266_s22, %s266_s22, %s267_s23  }
  0x13   :  { %s268_s26 = smov [#allocation5]   ;;  %s215_s30 = scalar_lea.hbm %s343_s1, 512 }
  0x14   :  { %s28_s27 = sshll.u32 %s268_s26, 4  ;;  %p216_p8 = scmp.ne.s32.totalorder %s343_s1, %s215_s30  ;;  %s29_s27 = int_to_ptr.vmem [resolvable:$true] %s28_s27 }
  0x15   :  { %p219_p9 = scmp.lt.u32.totalorder %s215_s30, %s343_s1 }
  0x17   :  { %p221_p10 = pnand %p219_p9, %p216_p8 }
  0x19   :  { %224 = shalt.err (!%p221_p10)
}
  0x1a   :  { %s225_s8 = scalar_lea.vmem %s29_s27, 512  ;;  %p230_p12 = scmp.lt.s32.totalorder %s29_s27, %s29_s27 }
  0x1b   :  { %p226_p11 = scmp.ne.s32.totalorder %s29_s27, %s225_s8  ;;  %p231_p13 = scmp.lt.s32.totalorder %s225_s8, %s225_s8 }
  0x1d   :  { %p232_p0 = por %p231_p13, %p230_p12 }
  0x1f   :  { %p233_p1 = pnand %p232_p0, %p226_p11 }
  0x21   :  { %236 = shalt.err (!%p233_p1)
}
  0x22   :  { %34 = dma.hbm_to_vmem [thread:$0]  %s343_s1, 512, %s29_s27, [#allocation6], %s266_s22, %s266_s22, %s267_s23  }
  0x23   :  { %259 = dma.done.wait [#allocation3], 256  }
  0x24   :  { %260 = vsyncadd [#allocation3], 4294967040 }
  0x25   :  { %261 = dma.done.wait [#allocation6], 512  }
  0x26   :  { %262 = vsyncadd [#allocation6], 4294966784  ;;  %vm56_vm0 = vcmask 261120   ;;  %v45_v0 = vld [vmem:[#allocation5] sm:$0xff]  ;;  %v46_v1 = vld [vmem:[#allocation5 + $0x8] sm:$0xff]  ;;  %s269_s11 = smov [#allocation7]  }
  0x27   :  { %v47_v2 = vld [vmem:[#allocation5 + $0x10] sm:$0xff]  ;;  %v180_v3 = vpack.c.bf16 %v46_v1, %v45_v0  ;;  %v48_v4 = vld [vmem:[#allocation5 + $0x18] sm:$0xff]  ;;  %s147_s12 = sshll.u32 %s269_s11, 4  ;;  %s148_s12 = int_to_ptr.vmem [resolvable:$true] %s147_s12 }
  0x28   :  { %v43_v5 = vld [vmem:[#allocation2] sm:$0xff]  ;;  %v184_v6 = vpack.c.bf16 %v48_v4, %v47_v2  ;;  %v44_v7 = vld [vmem:[#allocation2 + $0x8] sm:$0xff]  ;;  %s237_s13 = scalar_lea.vmem %s148_s12, 256  ;;  %p242_p3 = scmp.lt.s32.totalorder %s148_s12, %s148_s12 }
  0x29   :  { %177 = vmatprep.mubr.msk.f32.mxu0 %vm56_vm0, %v43_v5  ;;  %181 = vmatprep.subr.bf16.mxu0 %v180_v3  ;;  %v160_v8 = vld [vmem:[%s344_s2] ss:$0 sm:$0xff]  ;;  %p238_p2 = scmp.ne.s32.totalorder %s148_s12, %s237_s13  ;;  %p243_p4 = scmp.lt.s32.totalorder %s237_s13, %s237_s13 }
  0x2a   :  { %183 = vmatpush3.bf16.msra.mxu0 %v180_v3 }
  0x2b   :  { %185 = vmatprep.subr.bf16.mxu0 %v184_v6  ;;  %p244_p5 = por %p243_p4, %p242_p3 }
  0x2d   :  { %p245_p6 = pnand %p244_p5, %p238_p2 }
  0x2e   :  { %187 = vmatpush3.bf16.msra.mxu0 %v184_v6 }
  0x31   :  { %178 = vmatmul.mubr.msk.f32.vlgmr.msra.gmra.mrb[0].mxu0 %vm56_vm0, %v44_v7 }
 0x104   :  { %v179_v9 = vpop.f32.mrb[0].mxu0 }
 0x105   :  { %v135_v10 = vadd.f32 %v179_v9, %v160_v8  ;;  %v129_v11 = vpop.f32.mrb[1].mxu0 }
 0x106   :  { %v130_v12 = vadd.f32 %v160_v8, %v129_v11 }
 0x107   :  { %v139_v13 = vmax.f32 %v135_v10, 0.0 }
 0x108   :  { %v138_v14 = vmax.f32 %v130_v12, 0.0 }
 0x109   :  { %141 = vst.msk [vmem:[#allocation7 + $0x8] sm:$0xff] %vm56_vm0, %v139_v13 }
 0x10a   :  { %140 = vst.msk [vmem:[#allocation7] sm:$0xff] %vm56_vm0, %v138_v14 }
 0x10b   :  { %248 = shalt.err (!%p245_p6)
}
 0x10c   :  { %s249_s15 = scalar_lea.hbm %s345_s3, 256 }
 0x10d   :  { %p250_p7 = scmp.ne.s32.totalorder %s345_s3, %s249_s15  ;;  %p253_p8 = scmp.lt.u32.totalorder %s249_s15, %s345_s3 }
 0x10f   :  { %p255_p9 = pnand %p253_p8, %p250_p7 }
 0x111   :  { %258 = shalt.err (!%p255_p9)
}
 0x112   :  { %153 = dma.vmem_to_hbm [thread:$0]  %s148_s12, 256, %s345_s3, [#allocation4], %s266_s22, %s266_s22, %s267_s23  }
 0x113   :  { %263 = dma.done.wait [#allocation4], 256  }
 0x114   :  { %264 = vsyncadd [#allocation4], 4294967040 }
 0x115   :  { %157 = vsyncpa [#allocation3], 1 }
 0x116   :  { %158 = vsyncpa [#allocation6], 1 }
 0x117   :  { %159 = vsyncpa [#allocation4], 1 }

</bundles_post_ra>
